<compile_context>
chip_gen: v5e
topology: v5e:2x2
jax: 0.10.0
libtpu: 0.0.40
codegen_flags: <defaults>
</compile_context>

<pallas_src>
import jax
import jax.numpy as jnp
from jax.experimental import pallas as pl
from jax.experimental.pallas import tpu as pltpu


def _identity_kernel(h_ref, o_ref):
    # Pure pass-through copy of one tile.
    o_ref[...] = h_ref[...]


def residual_layer_forward(h):
    """Pallas implementation of ResidualLayer.forward.

    Returns (out, residual) with out == residual == h, mirroring the PyTorch
    module which stores the same tensor object on `self.residual` and returns
    it.  A single lane-dense tiled copy kernel materializes the result.
    """
    orig_shape = h.shape
    n = h.size
    if n == 0:
        return h, h

    # ---- Build a lane-dense 2-D view (no padding, no extra passes). -------
    lane_width = None
    for cand in (4096, 2048, 1024, 512, 256, 128):
        if n % cand == 0:
            lane_width = cand
            break
    if lane_width is not None:
        h2 = h.reshape(n // lane_width, lane_width)
    elif h.ndim >= 2:
        # Fall back to the natural feature axis; block = full width is legal
        # even when it is not a multiple of 128.
        h2 = h.reshape(-1, orig_shape[-1])
    else:
        h2 = h.reshape(1, -1)

    R, C = h2.shape
    itemsize = jnp.dtype(h.dtype).itemsize

    # Sublane packing multiple: f32 -> 8, bf16 -> 16, int8/fp8 -> 32.
    sub_mult = max(8, 32 // max(1, itemsize))

    # ~8 MiB per tile; with double-buffered input + output (4 buffers) this
    # stays <= 32 MiB, under the 48 MiB scoped-VMEM limit requested below
    # (safe headroom even on v7x's 64 MiB physical VMEM).
    target_tile_bytes = 8 * 1024 * 1024
    br = min(R, max(1, target_tile_bytes // max(1, C * itemsize)))
    if br < R:
        br = max(sub_mult, (br // sub_mult) * sub_mult)
    else:
        br = R  # full extent along sublanes is always legal

    grid = (pl.cdiv(R, br),)

    out2 = pl.pallas_call(
        _identity_kernel,
        out_shape=jax.ShapeDtypeStruct((R, C), h.dtype),
        grid_spec=pltpu.PrefetchScalarGridSpec(
            num_scalar_prefetch=0,
            grid=grid,
            in_specs=[pl.BlockSpec((br, C), lambda i: (i, 0))],
            out_specs=pl.BlockSpec((br, C), lambda i: (i, 0)),
        ),
        compiler_params=pltpu.CompilerParams(
            dimension_semantics=("parallel",),
            vmem_limit_bytes=48 * 1024 * 1024,
        ),
    )(h2)

    out = out2.reshape(orig_shape)
    # Module stores the (identical) tensor on self.residual — same object.
    return out, out


class ResidualLayer:
    """Thin Python wrapper mirroring the PyTorch module's interface."""

    def __init__(self, *args, **kwargs):
        self.residual = None
        if "layer_id" in kwargs:
            self.layer_id = kwargs["layer_id"]

    def __call__(self, h, *args):
        out, res = residual_layer_forward(h)
        self.residual = res
        return out

    def __repr__(self):
        return self.__class__.__name__ + f"[{getattr(self, 'layer_id', None)}]"


if __name__ == "__main__":
    key = jax.random.PRNGKey(0)
    # Small graph-NN-style input: (num_nodes=16, hidden=32)
    h = jax.random.normal(key, (16, 32), dtype=jnp.float32)

    layer = ResidualLayer(layer_id=0)
    out = layer(h)
    out = jax.block_until_ready(out)

    assert out.shape == h.shape and out.dtype == h.dtype
    assert jnp.array_equal(out, h)
    assert jnp.array_equal(layer.residual, h)
    print("KERNEL_OK")
</pallas_src>

<mosaic_0001>
module attributes {stable_mosaic.version = 11 : i64} {
  func.func @_identity_kernel(%arg0: i32, %arg1: memref<1x512xf32, #tpu.memory_space<vmem>>, %arg2: memref<1x512xf32, #tpu.memory_space<vmem>>) attributes {dimension_semantics = [#tpu.dimension_semantics<parallel>], iteration_bounds = array<i64: 1>, scalar_prefetch = 0 : i64, scratch_operands = 0 : i64, tpu.core_type = #tpu.core_type<tc>, window_params = [{transform_indices = @transform_0, window_bounds = array<i64: 1, 512>}, {transform_indices = @transform_1, window_bounds = array<i64: 1, 512>}]} {
    %c0 = arith.constant 0 : index
    %c0_0 = arith.constant 0 : index
    %0 = vector.load %arg1[%c0, %c0_0] : memref<1x512xf32, #tpu.memory_space<vmem>>, vector<1x512xf32>
    %c0_1 = arith.constant 0 : index
    %c0_2 = arith.constant 0 : index
    %1 = vector.load %arg2[%c0_1, %c0_2] : memref<1x512xf32, #tpu.memory_space<vmem>>, vector<1x512xf32>
    tpu.vector_store %arg2[%c0_1, %c0_2], %0 {strides = array<i32>} : memref<1x512xf32, #tpu.memory_space<vmem>>, vector<1x512xf32>,
    return
  }
  func.func @transform_0(%arg0: i32) -> (i32, i32) {
    %c0_i32 = arith.constant 0 : i32
    %c0_i32_0 = arith.constant 0 : i32
    return %arg0, %c0_i32 : i32, i32
  }
  func.func @transform_1(%arg0: i32) -> (i32, i32) {
    %c0_i32 = arith.constant 0 : i32
    %c0_i32_0 = arith.constant 0 : i32
    return %arg0, %c0_i32 : i32, i32
  }
}

</mosaic_0001>

<bundles_post_ra>
// kernel: tpu_custom_call.1
= control target key start
LH: loop header
LB: loop body
LE: loop exit
PB: predicated region body
PF: predicated region fallthrough
CT: control target
= control target key end

     0   :  { %6 = vsyncpa [#allocation3], 0  ;;  %s118_s0 = inlined_call_operand.hbm [shape: f32[1,512], index: 0, kind: input, shape index: {}]   ;;  %s119_s1 = inlined_call_operand.hbm [shape: f32[1,512], index: 1, kind: output, shape index: {}]  }
   0x1   :  { %7 = vsyncpa [#allocation4], 0  ;;  %s13_s8 = sshll.u32 %s118_s0, 4  ;;  %s100_s9 = smov [#allocation2]   ;;  %s14_s8 = int_to_ptr.hbm [resolvable:$true] %s13_s8 }
   0x2   :  { %s15_s10 = sshll.u32 %s100_s9, 4  ;;  %s16_s10 = int_to_ptr.vmem [resolvable:$true] %s15_s10 }
   0x3   :  { %18 = dma.hbm_to_vmem [thread:$0]  %s14_s8, 64, %s16_s10, [#allocation3]  }
   0x4   :  { %96 = dma.done.wait [#allocation3], 64  }
   0x5   :  { %97 = vsyncadd [#allocation3], 4294967232  ;;  %v24_v0 = vlaneseq  ;;  %s101_s11 = smov [#allocation5]   ;;  %s36_s15 = sshll.u32 %s119_s1, 4  ;;  %v23_v1 = vld [vmem:[#allocation2] sm:$0xf]  ;;  %s37_s15 = int_to_ptr.hbm [resolvable:$true] %s36_s15 }
   0x6   :  { %s34_s12 = sshll.u32 %s101_s11, 4  ;;  %s35_s12 = int_to_ptr.vmem [resolvable:$true] %s34_s12 }
   0x7   :  { %vm26_vm0 = vcmp.lt.s32.totalorder %v24_v0, 512 }
   0x8   :  { %28 = vst.msk [vmem:[#allocation5] sm:$0xf] %vm26_vm0, %v23_v1 }
   0x9   :  { %39 = dma.vmem_to_hbm [thread:$0]  %s35_s12, 64, %s37_s15, [#allocation4]  }
   0xa   :  { %98 = dma.done.wait [#allocation4], 64  }
   0xb   :  { %99 = vsyncadd [#allocation4], 4294967232 }
   0xc   :  { %44 = vsyncpa [#allocation3], 1 }
   0xd   :  { %45 = vsyncpa [#allocation4], 1 }

</bundles_post_ra>
